<compile_context>
chip_gen: v7x
topology: tpu7x:2x2x1
jax: 0.10.0
libtpu: 0.0.40
codegen_flags: <defaults>
</compile_context>

<pallas_src>
import jax
import jax.numpy as jnp
from jax.experimental import pallas as pl
from jax.experimental.pallas import tpu as pltpu


def _gram_tile_kernel(a_ref, b_ref, o_ref):
    # a_ref: (TM, D), b_ref: (TN, D)  ->  o_ref: (TM, TN) = a @ b^T
    # dot_general contracts the feature (last) dim of both operands, feeding
    # the MXU in native layout with no materialized transpose.
    acc = jax.lax.dot_general(
        a_ref[...],
        b_ref[...],
        dimension_numbers=(((1,), (1,)), ((), ())),
        preferred_element_type=jnp.float32,
    )
    o_ref[...] = acc if acc.dtype == o_ref.dtype else acc.astype(o_ref.dtype)


def gcn_decoder_forward(x, *, tm=512, tn=1024):
    """GCN_decoder.forward: x (B, N, D) -> y (B, N, N) = batched x @ x^T."""
    B, N, D = x.shape
    bytes_per = jnp.dtype(x.dtype).itemsize

    # Tile selection:
    #   tm: multiple of 8 (sublanes); large to amortize rhs re-fetches.
    #   tn: multiple of 128 (lane-dense output stores).
    #   If N < tile, use the full dim (always layout-legal, single block).
    tm_eff = N if N < tm else tm
    tn_eff = N if N < tn else tn

    n_i = pl.cdiv(N, tm_eff)
    n_j = pl.cdiv(N, tn_eff)
    grid = (B, n_i, n_j)

    # Actual traffic: lhs read once (resident across inner j axis), rhs
    # re-read n_i times, output written exactly once.
    cost = pl.CostEstimate(
        flops=2 * B * N * N * D,
        transcendentals=0,
        bytes_accessed=B * (N * D + n_i * N * D + N * N) * bytes_per,
    )

    # Double-buffered lhs/rhs/out tiles + headroom for Mosaic internals.
    # Cap well below v7x's 64 MiB physical VMEM.
    tile_bytes = bytes_per * (tm_eff * D + tn_eff * D + tm_eff * tn_eff)
    vmem_limit = int(min(40 * 2**20, max(8 * 2**20, 2 * tile_bytes + 2 * 2**20)))

    return pl.pallas_call(
        _gram_tile_kernel,
        out_shape=jax.ShapeDtypeStruct((B, N, N), x.dtype),
        grid_spec=pltpu.PrefetchScalarGridSpec(
            num_scalar_prefetch=0,
            grid=grid,
            in_specs=[
                pl.BlockSpec((pl.Squeezed(), tm_eff, D), lambda b, i, j: (b, i, 0)),
                pl.BlockSpec((pl.Squeezed(), tn_eff, D), lambda b, i, j: (b, j, 0)),
            ],
            out_specs=pl.BlockSpec(
                (pl.Squeezed(), tm_eff, tn_eff), lambda b, i, j: (b, i, j)
            ),
        ),
        compiler_params=pltpu.CompilerParams(
            dimension_semantics=("parallel", "parallel", "parallel"),
            vmem_limit_bytes=vmem_limit,
        ),
        cost_estimate=cost,
    )(x, x)


if __name__ == "__main__":
    # GCN_decoder has no parameters (__init__ is empty) — nothing to initialize.
    key = jax.random.PRNGKey(0)
    k1, k2 = jax.random.split(key)

    # Small shape consistent with the module (single-block fast path).
    B, N, D = 2, 8, 32
    x = jax.random.normal(k1, (B, N, D), dtype=jnp.float32)
    y = jax.block_until_ready(gcn_decoder_forward(x))
    y_ref = jnp.einsum("bnd,bmd->bnm", x, x)
    assert y.shape == (B, N, N)
    assert jnp.allclose(y, y_ref, atol=1e-5, rtol=1e-5)

    # Multi-tile path with ragged edge blocks on both sublane and lane dims
    # (N=300 is neither a multiple of 8 nor of 128) — exercises masked stores
    # and partial input blocks, with NO output padding or post-slice.
    B2, N2, D2 = 1, 300, 64
    x2 = jax.random.normal(k2, (B2, N2, D2), dtype=jnp.float32)
    y2_ref = jnp.einsum("bnd,bmd->bnm", x2, x2)

    y2_tiled = jax.block_until_ready(gcn_decoder_forward(x2, tm=64, tn=128))
    assert y2_tiled.shape == (B2, N2, N2)
    assert jnp.allclose(y2_tiled, y2_ref, atol=1e-4, rtol=1e-5)

    # Default (large-tile) path on the same input collapses to a single block.
    y2_big = jax.block_until_ready(gcn_decoder_forward(x2))
    assert jnp.allclose(y2_big, y2_ref, atol=1e-4, rtol=1e-5)

    print("KERNEL_OK")
</pallas_src>

<mosaic_0001>
module attributes {stable_mosaic.version = 11 : i64} {
  func.func @_gram_tile_kernel(%arg0: i32, %arg1: i32, %arg2: i32, %arg3: memref<1x8x32xf32, #tpu.memory_space<vmem>>, %arg4: memref<1x8x32xf32, #tpu.memory_space<vmem>>, %arg5: memref<1x8x8xf32, #tpu.memory_space<vmem>>) attributes {dimension_semantics = [#tpu.dimension_semantics<parallel>, #tpu.dimension_semantics<parallel>, #tpu.dimension_semantics<parallel>], iteration_bounds = array<i64: 2, 1, 1>, scalar_prefetch = 0 : i64, scratch_operands = 0 : i64, tpu.core_type = #tpu.core_type<tc>, window_params = [{transform_indices = @transform_0, window_bounds = array<i64: 1, 8, 32>}, {transform_indices = @transform_1, window_bounds = array<i64: 1, 8, 32>}, {transform_indices = @transform_2, window_bounds = array<i64: 1, 8, 8>}]} {
    %c0 = arith.constant 0 : index
    %c0_0 = arith.constant 0 : index
    %c0_1 = arith.constant 0 : index
    %0 = vector.load %arg3[%c0, %c0_0, %c0_1] : memref<1x8x32xf32, #tpu.memory_space<vmem>>, vector<1x8x32xf32>
    %1 = vector.shape_cast %0 : vector<1x8x32xf32> to vector<8x32xf32>
    %c0_2 = arith.constant 0 : index
    %c0_3 = arith.constant 0 : index
    %c0_4 = arith.constant 0 : index
    %2 = vector.load %arg4[%c0_2, %c0_3, %c0_4] : memref<1x8x32xf32, #tpu.memory_space<vmem>>, vector<1x8x32xf32>
    %3 = vector.shape_cast %2 : vector<1x8x32xf32> to vector<8x32xf32>
    %cst = arith.constant dense<0.000000e+00> : vector<8x8xf32>
    %4 = tpu.matmul %1, %3, %cst {dimension_numbers = #tpu.dot_dimension_numbers<[1], [1], [0], [0], [0, 0, 1, 0], [], []>} : vector<8x32xf32>, vector<8x32xf32>, vector<8x8xf32> -> vector<8x8xf32>
    %c0_5 = arith.constant 0 : index
    %c0_6 = arith.constant 0 : index
    %c0_7 = arith.constant 0 : index
    %5 = vector.load %arg5[%c0_5, %c0_6, %c0_7] : memref<1x8x8xf32, #tpu.memory_space<vmem>>, vector<1x8x8xf32>
    %6 = vector.shape_cast %5 : vector<1x8x8xf32> to vector<8x8xf32>
    %7 = vector.shape_cast %4 : vector<8x8xf32> to vector<1x8x8xf32>
    tpu.vector_store %arg5[%c0_5, %c0_6, %c0_7], %7 {strides = array<i32>} : memref<1x8x8xf32, #tpu.memory_space<vmem>>, vector<1x8x8xf32>,
    return
  }
  func.func @transform_0(%arg0: i32, %arg1: i32, %arg2: i32) -> (i32, i32, i32) {
    %c0_i32 = arith.constant 0 : i32
    %c0_i32_0 = arith.constant 0 : i32
    return %arg0, %arg1, %c0_i32 : i32, i32, i32
  }
  func.func @transform_1(%arg0: i32, %arg1: i32, %arg2: i32) -> (i32, i32, i32) {
    %c0_i32 = arith.constant 0 : i32
    %c0_i32_0 = arith.constant 0 : i32
    return %arg0, %arg2, %c0_i32 : i32, i32, i32
  }
  func.func @transform_2(%arg0: i32, %arg1: i32, %arg2: i32) -> (i32, i32, i32) {
    %c0_i32 = arith.constant 0 : i32
    return %arg0, %arg1, %arg2 : i32, i32, i32
  }
}

</mosaic_0001>

<bundles_post_ra>
// kernel: tpu_custom_call.1
= control target key start
LH: loop header
LB: loop body
LE: loop exit
PB: predicated region body
PF: predicated region fallthrough
CT: control target
= control target key end

     0   :  { %7 = vsyncpa [#allocation3], 0  ;;  %s912_s0 = inlined_call_operand.hbm [shape: f32[2,8,32], index: 0, kind: input, shape index: {}]   ;;  %s913_s1 = inlined_call_operand.hbm [shape: f32[2,8,32], index: 1, kind: input, shape index: {}]   ;;  %s914_s2 = inlined_call_operand.hbm [shape: f32[2,8,8], index: 2, kind: output, shape index: {}]  }
   0x1   :  { %9 = vsyncpa [#allocation3 + $0x1], 0 }
   0x2   :  { %10 = vsyncpa [#allocation6], 0 }
   0x3   :  { %12 = vsyncpa [#allocation6 + $0x1], 0 }
   0x4   :  { %13 = vsyncpa [#allocation4], 0 }
   0x5   :  { %15 = vsyncpa [#allocation4 + $0x1], 0  ;;  %s692_s9 = smov 0   ;;  %s694_s10 = smov 0  }
   0x6   :  { %s696_s11 = smov 0   ;;  %s698_s12 = smov 0  }
   0x7   :  { %s700_s13 = smov 0   ;;  %s702_s14 = smov 0  }
   0x8 LB: > { %s430_s15 = sadd.s32 4294967295, %s670_s14   ;;  %s431_s16 = sadd.s32 4294967294, %s670_s14   ;;  %s670_s14 = sphi %s702_s14, %s21_s14   ;;  %s666_s13 = sphi %s700_s13, %s934_s13   ;;  %s662_s12 = sphi %s698_s12, %s933_s12   ;;  %s658_s11 = sphi %s696_s11, %s932_s11   ;;  %s654_s10 = sphi %s694_s10, %s931_s10   ;;  %s650_s9 = sphi %s692_s9, %s930_s9  }
   0x9   : > { %s40_s17 = sadd.s32 1, %s666_s13  ;;  %s49_s18 = sadd.s32 1, %s658_s11 }
   0xa   : > { %p42_p0 = scmp.ge.s32.totalorder %s40_s17, 2  ;;  %p56_p1 = scmp.ne.s32.totalorder %s658_s11, %s654_s10 }
   0xb   : > { %p57_p2 = scmp.eq.s32.totalorder %s670_s14, 0  ;;  %p62_p3 = scmp.ne.s32.totalorder %s654_s10, %s650_s9 }
   0xc   : > { %s936_s17 = smov (%p42_p0, %s40_s17), 0  ;;  %p63_p5 = scmp.eq.s32.totalorder %s430_s15, 0 }
   0xd   : > { %p733_p4 = por %p57_p2, %p56_p1  ;;  %s44_s20 = ssub.s32 %s666_s13, %s936_s17 }
   0xe   : > { %p118_p6 = scmp.eq.s32.totalorder %s430_s15, 1  ;;  %p47_p7 = scmp.eq.s32.totalorder %s44_s20, 0 }
   0xf   : > { %p739_p8 = por %p63_p5, %p62_p3  ;;  %p124_p10 = scmp.eq.s32.totalorder %s431_s16, 1 }
  0x10   : > { %p743_p9 = por %p118_p6, %p56_p1  ;;  %p472_p13 = scmp.lt.s32.totalorder %s670_s14, 2 }
  0x11   : > { %s918_s21 = scalar_select %p739_p8, 1, 0 }
  0x12   : > { %s919_s22 = scalar_select %p743_p9, 1, 0 }
  0x13   : > { %s748_s23 = scalar_select %p47_p7, %s658_s11, %s49_s18  }
  0x14   : > { %p750_p11 = por %p124_p10, %p62_p3  ;;  %s757_s25 = sand.u32 1, %s658_s11  }
  0x15   : > { %s434_s26 = sshll.u32 %s757_s25, 3  ;;  %s435_s27 = sshll.u32 %s666_s13, 7 }
  0x16   : > { %s920_s24 = scalar_select %p750_p11, 1, 0 }
  0x17   : > { %s766_s30 = scalar_lea.hbm %s912_s0, %s435_s27  ;;  %s148_s3 = scalar_lea.vmem [#allocation2], %s434_s26 }
  0x18   : > { %s156_s4 = sshll.u32 %s148_s3, 4  ;;  %p774_p0 = pnand %p472_p13, %p733_p4  ;;  %s770_s4 = int_to_ptr.vmem [resolvable:$true] %s156_s4 }
  0x19   : > { %s145_s6 = scalar_lea.sflag [#allocation3], %s757_s25  ;;  %s524_s7 = scalar_lea.hbm %s766_s30, 128 }
  0x1a   : > { %p525_p3 = scmp.ne.s32.totalorder %s766_s30, %s524_s7  ;;  %p526_p5 = pneg %p774_p0 }
  0x1b   : > { %s529_s16 = scalar_lea.hbm %s912_s0, 256  ;;  %p530_p4 = scmp.lt.u32.totalorder %s766_s30, %s912_s0 }
  0x1c   : > { %p527_p6 = pnand %p526_p5, %p525_p3  ;;  %p531_p10 = scmp.lt.u32.totalorder %s529_s16, %s524_s7 }
  0x1d   : > { %p533_p12 = scmp.lt.u32.totalorder %s524_s7, %s766_s30 }
  0x1e   : > { %p528_p7 = pneg %p527_p6  ;;  %p532_p13 = por %p531_p10, %p530_p4 }
  0x20   : > { %p534_p1 = por %p533_p12, %p532_p13 }
  0x22   : > { %p535_p2 = pnand %p534_p1, %p528_p7 }
  0x24   : > { %538 = shalt.err (!%p535_p2)
}
  0x25   : > { %s539_s20 = scalar_lea.vmem %s770_s4, 128  ;;  %s672_s28 = smov [#allocation2]  }
  0x26   : > { %p540_p3 = scmp.ne.s32.totalorder %s770_s4, %s539_s20  ;;  %s544_s29 = sshll.u32 %s672_s28, 4  ;;  %s545_s29 = int_to_ptr.vmem [resolvable:$false] %s544_s29 }
  0x27   : > { %s546_s3 = scalar_lea.vmem %s545_s29, 256  ;;  %p547_p9 = scmp.lt.s32.totalorder %s770_s4, %s545_s29 }
  0x28   : > { %p542_p6 = pnand %p540_p3, %p526_p5  ;;  %p548_p4 = scmp.lt.s32.totalorder %s546_s3, %s539_s20 }
  0x2a   : > { %p543_p11 = pneg %p542_p6  ;;  %p549_p10 = por %p548_p4, %p547_p9 }
  0x2c   : > { %p550_p12 = pnand %p549_p10, %p543_p11 }
  0x2e   : > { %553 = shalt.err (!%p550_p12)
}
  0x2f   : > { %464 = dma.hbm_to_vmem [thread:$0]  (!%p774_p0), %s766_s30, 128, %s770_s4, %s145_s6  }
  0x30   : > { %p922_p1 = scmp.lt.s32.totalorder %s670_s14, 3  ;;  %p923_p2 = scmp.ge.s32.totalorder %s670_s14, 1 }
  0x31   : > { %s819_s16 = scalar_lea.hbm %s913_s1, %s435_s27  ;;  %s167_s18 = scalar_lea.vmem [#allocation5], %s434_s26 }
  0x32   : > { %p810_p7 = pnand %p923_p2, %p922_p1  ;;  %s175_s19 = sshll.u32 %s167_s18, 4  ;;  %s176_s19 = int_to_ptr.vmem [resolvable:$true] %s175_s19 }
  0x33   : > { %s164_s30 = scalar_lea.sflag [#allocation6], %s757_s25  ;;  %s554_s4 = scalar_lea.hbm %s819_s16, 128 }
  0x34   : > { %s924_s7 = scalar_select %p810_p7, 1, 0 }
  0x35   : > { %p555_p9 = scmp.ne.s32.totalorder %s819_s16, %s554_s4  ;;  %s559_s27 = scalar_lea.hbm %s913_s1, 256 }
  0x36   : > { %p560_p3 = scmp.lt.u32.totalorder %s819_s16, %s913_s1  ;;  %p561_p6 = scmp.lt.u32.totalorder %s559_s27, %s554_s4 }
  0x37   : > { %p557_p11 = pnand %p555_p9, %p526_p5  ;;  %p563_p10 = scmp.lt.u32.totalorder %s554_s4, %s819_s16 }
  0x38   : > { %p562_p4 = por %p561_p6, %p560_p3 }
  0x39   : > { %p558_p13 = pneg %p557_p11 }
  0x3a   : > { %p564_p12 = por %p563_p10, %p562_p4 }
  0x3c   : > { %p565_p1 = pnand %p564_p12, %p558_p13 }
  0x3e   : > { %568 = shalt.err (!%p565_p1)
}
  0x3f   : > { %s569_s25 = scalar_lea.vmem %s176_s19, 128  ;;  %s673_s26 = smov [#allocation5]  }
  0x40   : > { %p570_p2 = scmp.ne.s32.totalorder %s176_s19, %s569_s25  ;;  %s574_s3 = sshll.u32 %s673_s26, 4  ;;  %s575_s3 = int_to_ptr.vmem [resolvable:$false] %s574_s3 }
  0x41   : > { %s576_s8 = scalar_lea.vmem %s575_s3, 256  ;;  %p577_p8 = scmp.lt.s32.totalorder %s176_s19, %s575_s3 }
  0x42   : > { %p572_p9 = pnand %p570_p2, %p526_p5  ;;  %p578_p7 = scmp.lt.s32.totalorder %s576_s8, %s569_s25 }
  0x44   : > { %p573_p11 = pneg %p572_p9  ;;  %p579_p3 = por %p578_p7, %p577_p8 }
  0x46   : > { %p580_p6 = pnand %p579_p3, %p573_p11 }
  0x48   : > { %583 = shalt.err (!%p580_p6)
}
  0x49   : > { %467 = dma.hbm_to_vmem [thread:$0]  (!%p774_p0), %s819_s16, 128, %s176_s19, %s164_s30  }
  0x4a   : > { %p925_p13 = scmp.ne.s32.totalorder %s924_s7, 0 }
  0x4b   : > { %s846_s15 = sand.u32 (!%p925_p13), 1, %s654_s10   ;;  %p926_p5 = scmp.ne.s32.totalorder (!%p925_p13), %s918_s21, 0 }
  0x4c   : > { %184 = sbr.rel (%p925_p13) target bundleno = 317 (0x13d), region = 28  ;;  %s439_s18 = sshll.u32 (!%p925_p13), %s846_s15, 3 }
  0x4d   : > { %s187_s4 = scalar_lea.sflag (!%p925_p13), [#allocation3], %s846_s15  ;;  %s190_s6 = scalar_lea.vmem (!%p925_p13), [#allocation2], %s439_s18 }
  0x53   : > { %637 = dma.done.wait (%p926_p5), %s187_s4, 128  }
  0x54   : > { %639 = vsyncadd (%p926_p5), %s187_s4, 4294967168  ;;  %s196_s5 = scalar_lea.sflag [#allocation6], %s846_s15  ;;  %s199_s16 = scalar_lea.vmem [#allocation5], %s439_s18 }
  0x55   : > { %641 = dma.done.wait (%p926_p5), %s196_s5, 128  }
  0x56   : > { %643 = vsyncadd (%p926_p5), %s196_s5, 4294967168  ;;  %v674_v0 = vmov 0.0   ;;  %vm675_vm0 = vmmov 0   ;;  %vm227_vm1 = vcmask 261120   ;;  %v226_v1 = vld [vmem:[%s199_s16] sm:$0xff]  ;;  %v225_v2 = vld [vmem:[%s190_s6] sm:$0xff] }
  0x57   : > { %450 = vmatprep.subr.mxu0 %v674_v0  ;;  %452 = vmatprep.mubr.msk.f32.mxu0 %vm675_vm0, %v674_v0  ;;  %s445_s7 = sshll.u32 %s662_s12, 7  ;;  %s224_s19 = scalar_lea.vmem [#allocation7], %s439_s18  ;;  %vm304_vm2 = vcmask 64512  }
  0x58   : > { %451 = vmatpush3.xpose.msk.msra.mxu0 %vm227_vm1, %v226_v1  ;;  %s322_s30 = sshll.u32 %s224_s19, 4  ;;  %s863_s21 = scalar_lea.hbm %s914_s2, %s445_s7  ;;  %s865_s30 = int_to_ptr.vmem [resolvable:$true] %s322_s30 }
  0x59   : > { %s307_s28 = scalar_lea.sflag [#allocation4], %s846_s15  ;;  %s584_s29 = scalar_lea.vmem %s865_s30, 128 }
  0x5a   : > { %p585_p8 = scmp.ne.s32.totalorder %s865_s30, %s584_s29  ;;  %p927_p0 = scmp.ne.s32.totalorder %s919_s22, 0 }
  0x5b   : > { %453 = vmatmul.mubr.msk.f32.vlgmr.msra.gmra.mrb[0].mxu0 %vm227_vm1, %v225_v2  ;;  %s676_s12 = smov [#allocation7]  }
  0x5c   : > { %p586_p7 = pnand %p585_p8, %p927_p0  ;;  %s588_s25 = sshll.u32 %s676_s12, 4  ;;  %s589_s25 = int_to_ptr.vmem [resolvable:$false] %s588_s25 }
  0x5d   : > { %s590_s26 = scalar_lea.vmem %s589_s25, 256  ;;  %p591_p10 = scmp.lt.s32.totalorder %s865_s30, %s589_s25 }
  0x5e   : > { %p587_p4 = pneg %p586_p7  ;;  %p592_p12 = scmp.lt.s32.totalorder %s590_s26, %s584_s29 }
  0x60   : > { %p593_p1 = por %p592_p12, %p591_p10 }
  0x62   : > { %p594_p2 = pnand %p593_p1, %p587_p4 }
 0x12e   : > { %v300_v3 = vpop.f32.mrb[0].mxu0 }
 0x12f   : > { %305 = vst.msk [vmem:[%s224_s19] sm:$0xff] %vm304_vm2, %v300_v3  ;;  %v454_v4 = vpop.f32.mrb[1].mxu0 }
 0x130   : > { %597 = shalt.err (!%p594_p2)
}
 0x131   : > { %s598_s3 = scalar_lea.hbm %s863_s21, 128  ;;  %s602_s18 = scalar_lea.hbm %s914_s2, 256 }
 0x132   : > { %p599_p9 = scmp.ne.s32.totalorder %s863_s21, %s598_s3  ;;  %p603_p6 = scmp.lt.u32.totalorder %s863_s21, %s914_s2 }
 0x133   : > { %p604_p13 = scmp.lt.u32.totalorder %s602_s18, %s598_s3  ;;  %p606_p8 = scmp.lt.u32.totalorder %s598_s3, %s863_s21 }
 0x134   : > { %p600_p11 = pnand %p599_p9, %p927_p0 }
 0x135   : > { %p605_p5 = por %p604_p13, %p603_p6 }
 0x136   : > { %p601_p3 = pneg %p600_p11 }
 0x137   : > { %p607_p7 = por %p606_p8, %p605_p5 }
 0x139   : > { %p608_p4 = pnand %p607_p7, %p601_p3 }
 0x13b   : > { %611 = shalt.err (!%p608_p4)
}
 0x13c   : > { %459 = dma.vmem_to_hbm [thread:$0]  (%p927_p0), %s865_s30, 128, %s863_s21, %s307_s28  }
 0x13d PF: > { %s334_s5 = sand.u32 1, %s650_s9   ;;  %p928_p10 = scmp.ne.s32.totalorder %s920_s24, 0 }
 0x13e   : > { %p929_p12 = scmp.ge.s32.totalorder %s670_s14, 2  ;;  %s335_s16 = scalar_lea.sflag [#allocation4], %s334_s5 }
 0x140   : > { %p469_p1 = pnand %p929_p12, %p928_p10 }
 0x142   : > { %645 = dma.done.wait (!%p469_p1), %s335_s16, 128  }
 0x143   : > { %647 = vsyncadd (!%p469_p1), %s335_s16, 4294967168  ;;  %s21_s14 = sadd.s32 1, %s670_s14   ;;  %s930_s9 = smov %s654_s10 }
 0x144   : > { %p18_p2 = scmp.ge.s32.totalorder %s21_s14, 4   ;;  %s931_s10 = smov %s658_s11 }
 0x145   : > { %s932_s11 = smov %s748_s23  ;;  %s933_s12 = smov %s666_s13 }
 0x146   : > { %s934_s13 = smov %s936_s17  ;;  %20 = sbr.rel (!%p18_p2) target bundleno = 8 (0x8), region = 86 }
 0x14d   :  { %340 = vsyncpa [#allocation3], 1 }
 0x14e   :  { %342 = vsyncpa [#allocation3 + $0x1], 1 }
 0x14f   :  { %343 = vsyncpa [#allocation6], 1 }
 0x150   :  { %345 = vsyncpa [#allocation6 + $0x1], 1 }
 0x151   :  { %346 = vsyncpa [#allocation4], 1 }
 0x152   :  { %348 = vsyncpa [#allocation4 + $0x1], 1 }

</bundles_post_ra>
